<compile_context>
chip_gen: v7x
topology: tpu7x:2x2x1
jax: 0.10.0
libtpu: 0.0.40
codegen_flags: <defaults>
</compile_context>

<pallas_src>
from functools import partial

import numpy as np

import jax
import jax.numpy as jnp
from jax.experimental import pallas as pl
from jax.experimental.pallas import tpu as pltpu

_BF16 = jnp.bfloat16


def _ru(x, m=128):
    """Round up to a multiple of m (lane-density padding)."""
    return ((x + m - 1) // m) * m


# ------------------------------- fused kernel --------------------------------
def _convnet_kernel(l1_ref, k1_ref, b1_ref, k2_ref, b2_ref, k3_ref, b3_ref,
                    fw1_ref, fb1_ref, fw2_ref, fb2_ref, o_ref,
                    *, bm, geo2, geo3):
    f32, bf16 = jnp.float32, jnp.bfloat16

    def leaky(v):                       # F.leaky_relu default negative_slope
        return jnp.where(v > 0, v, f32(0.01) * v)

    def conv_dot(lhs, k_ref, b_ref):    # one long-K MXU dot + bias + leaky
        y = jnp.dot(lhs.astype(bf16), k_ref[...], preferred_element_type=f32)
        return leaky(y + b_ref[...])

    def gather_rows(a, geo):
        # Row-only im2col: width taps live in K's Toeplitz structure, so the
        # LHS row for (sample n, out height u) is the lane-concat of kh
        # consecutive rows of `a`.  Stored activation widths are multiples of
        # 128, so every concatenate is lane-tile aligned; these layers have
        # padding=0 so no out-of-range rows occur.
        h_in, h_out, kh, stride = geo
        rows = []
        for n in range(bm):
            for u in range(h_out):
                r0 = n * h_in + stride * u
                taps = [a[r0 + i:r0 + i + 1, :] for i in range(kh)]
                rows.append(taps[0] if kh == 1 else jnp.concatenate(taps, axis=1))
        return rows[0] if len(rows) == 1 else jnp.concatenate(rows, axis=0)

    a = conv_dot(l1_ref[...], k1_ref, b1_ref)            # conv1: (bm*6, 256)
    a = conv_dot(gather_rows(a, geo2), k2_ref, b2_ref)   # conv2: (bm*2, 128)
    a = conv_dot(gather_rows(a, geo3), k3_ref, b3_ref)   # conv3: (bm,   128)
    h = jnp.dot(a.astype(bf16), fw1_ref[...],
                preferred_element_type=f32) + fb1_ref[...]
    h = jnp.maximum(h, f32(0.0))                          # fc hidden (ReLU)
    out = jnp.dot(h.astype(bf16), fw2_ref[...],
                  preferred_element_type=f32) + fb2_ref[...]
    o_ref[...] = out.astype(o_ref.dtype)


# ------------------------- one-time weight re-packing -------------------------
def _pack_conv(w, b, h_in, w_in, stride, pad, in_stride):
    """Pack a PyTorch Conv2d weight (Cout,Cin,kh,kw) into one fused-GEMM matrix.

    Returns K of shape (kh*in_stride, out_stride) and a bias row, such that
        Y[(n,u_h), u_w*Cout + o] = sum L[(n,u_h), i*in_stride + w*Cin + c] * K[...]
    Width taps and width zero-padding are folded into K's Toeplitz structure;
    height taps are gathered by the caller (host for conv1, kernel for conv2/3).
    """
    cout, cin, kh, kw = w.shape
    h_out = (h_in + 2 * pad - kh) // stride + 1
    w_out = (w_in + 2 * pad - kw) // stride + 1
    in_cols, out_cols = w_in * cin, w_out * cout
    assert in_cols <= in_stride
    out_stride = _ru(out_cols)
    taps = np.zeros((kw, w_in, w_out), np.float32)
    for j in range(kw):
        for u in range(w_out):
            wi = stride * u + j - pad
            if 0 <= wi < w_in:
                taps[j, wi, u] = 1.0
    # K[i, w*cin + c, u*cout + o] = sum_j taps[j, w, u] * W[o, c, i, j]
    k = jnp.einsum("jwu,ocij->iwcuo", jnp.asarray(taps), w)
    k = k.reshape(kh, in_cols, out_cols)
    k = jnp.pad(k, ((0, 0), (0, in_stride - in_cols), (0, out_stride - out_cols)))
    k = k.reshape(kh * in_stride, out_stride).astype(_BF16)
    # Padded bias entries MUST stay 0 so padded lanes remain exactly 0 after
    # leaky_relu (leaky(0) == 0); the next layer's K rows for them are 0 too.
    brow = jnp.pad(jnp.tile(b, w_out), (0, out_stride - out_cols))
    brow = brow.astype(jnp.float32).reshape(1, out_stride)
    return {"k": k, "b": brow}, h_out, w_out, out_stride


def prepare_convnet(params, input_shape, output_dim):
    """One-time re-packing of PyTorch-layout params for the fused kernel."""
    c_in, h_in, w_in = input_shape
    # conv1: host-side row-im2col feeds it, so its per-tap contraction block is
    # exactly w_in*c_in (=64) with NO dead lane padding in K1.
    l1, h1, w1o, s1 = _pack_conv(params["w1"], params["b1"], h_in, w_in, 3, 4,
                                 in_stride=w_in * c_in)
    l2, h2, w2o, s2 = _pack_conv(params["w2"], params["b2"], h1, w1o, 2, 0,
                                 in_stride=s1)
    l3, h3, w3o, s3 = _pack_conv(params["w3"], params["b3"], h2, w2o, 1, 0,
                                 in_stride=s2)
    # TODO(synk): if the conv stack ever ends with spatial size > 1x1, the
    # PyTorch NCHW flatten order differs from this (h, w*c) layout and fc1_w
    # would need a matching column permutation here.
    assert h3 == 1 and w3o == 1, "fc junction assumes a 1x1 conv3 output"
    hid, fc_in = params["fc1_w"].shape                     # torch Linear: (out, in)
    assert fc_in == params["w3"].shape[0] * h3 * w3o
    fw1 = jnp.pad(params["fc1_w"].T, ((0, s3 - fc_in), (0, 0))).astype(_BF16)
    fb1 = params["fc1_b"].astype(jnp.float32).reshape(1, hid)
    out_pad = _ru(output_dim)
    fw2 = jnp.pad(params["fc2_w"].T, ((0, 0), (0, out_pad - output_dim))).astype(_BF16)
    fb2 = jnp.pad(params["fc2_b"], (0, out_pad - output_dim))
    fb2 = fb2.astype(jnp.float32).reshape(1, out_pad)
    weights = {"k1": l1["k"], "b1": l1["b"], "k2": l2["k"], "b2": l2["b"],
               "k3": l3["k"], "b3": l3["b"],
               "fw1": fw1, "fb1": fb1, "fw2": fw2, "fb2": fb2}
    meta = {"kh1": int(params["w1"].shape[2]), "stride1": 3, "pad1": 4,
            "h_out1": h1,
            "c2": (h1, h2, int(params["w2"].shape[2]), 2),
            "c3": (h2, h3, int(params["w3"].shape[2]), 1),
            "output_dim": output_dim}
    return weights, meta


# -------------------------------- forward pass --------------------------------
def _build_l1(x, kh, stride, pad, h_out):
    """Host-side relayout of the tiny NCHW input into conv1's fused-GEMM LHS.

    L1[n*h_out + u, i*(W*C) + w*C + c] = x_zero-padded-in-height[n, c, s*u+i-p, w]
    """
    b, c, h, w = x.shape
    a = jnp.transpose(x, (0, 2, 3, 1)).reshape(b, h, w * c)   # rows=(n,h), cols=(w*c)
    a = jnp.pad(a, ((0, 0), (pad, pad), (0, 0)))              # height zero-padding
    win = jnp.stack([a[:, stride * u: stride * u + kh, :] for u in range(h_out)],
                    axis=1)                                   # (b, h_out, kh, w*c)
    return win.reshape(b * h_out, kh * w * c)


def convnet_forward(weights, x, meta):
    """Fused ConvNet forward: x is NCHW, returns (B, output_dim) logits."""
    b = x.shape[0]
    h_out1 = meta["h_out1"]
    l1 = _build_l1(x, meta["kh1"], meta["stride1"], meta["pad1"], h_out1)
    l1 = l1.astype(_BF16)                                     # bf16 MXU operand
    out_pad = weights["fw2"].shape[1]

    # Batch-chunk grid: bm samples per step.  Either one full-array chunk or a
    # chunk whose row counts are multiples of 8 (BlockSpec tiling rule).
    bm = 8 if (b > 8 and b % 8 == 0) else b
    assert b % bm == 0
    grid = (b // bm,)

    kernel = partial(_convnet_kernel, bm=bm, geo2=meta["c2"], geo3=meta["c3"])
    warg_names = ("k1", "b1", "k2", "b2", "k3", "b3", "fw1", "fb1", "fw2", "fb2")
    wargs = tuple(weights[n] for n in warg_names)

    def const_spec(a):  # weight-stationary: same block every step -> DMA'd once
        return pl.BlockSpec(a.shape, lambda i: (0, 0))

    out = pl.pallas_call(
        kernel,
        out_shape=jax.ShapeDtypeStruct((b, out_pad), jnp.float32),
        grid=grid,
        in_specs=[pl.BlockSpec((bm * h_out1, l1.shape[1]), lambda i: (i, 0))]
                 + [const_spec(a) for a in wargs],
        out_specs=pl.BlockSpec((bm, out_pad), lambda i: (i, 0)),
        compiler_params=pltpu.CompilerParams(
            dimension_semantics=("parallel",),          # v7x: 2 TCs split chunks
            vmem_limit_bytes=32 * 1024 * 1024,          # footprint here is ~1.3 MB
        ),
    )(l1, *wargs)
    return out[:, :meta["output_dim"]]


# ---------------------------- plain-JAX references -----------------------------
def _reference_forward(x, params, mm_dtype):
    """Mirror of the PyTorch module; matmul operands cast to mm_dtype,
    accumulation in f32 (mm_dtype=f32 -> exact PyTorch semantics,
    mm_dtype=bf16 -> same operand precision as the fused kernel)."""
    def conv(y, w, b, stride, pad):
        y = jax.lax.conv_general_dilated(
            y.astype(mm_dtype), w.astype(mm_dtype),
            window_strides=(stride, stride),
            padding=((pad, pad), (pad, pad)),
            dimension_numbers=("NCHW", "OIHW", "NCHW"),
            preferred_element_type=jnp.float32)
        return y + b[None, :, None, None]

    lrelu = lambda v: jnp.where(v > 0, v, 0.01 * v)
    y = lrelu(conv(x, params["w1"], params["b1"], 3, 4))
    y = lrelu(conv(y, params["w2"], params["b2"], 2, 0))
    y = lrelu(conv(y, params["w3"], params["b3"], 1, 0))
    y = y.reshape(y.shape[0], -1)
    h = jnp.dot(y.astype(mm_dtype), params["fc1_w"].T.astype(mm_dtype),
                preferred_element_type=jnp.float32) + params["fc1_b"]
    h = jnp.maximum(h, 0.0)
    return jnp.dot(h.astype(mm_dtype), params["fc2_w"].T.astype(mm_dtype),
                   preferred_element_type=jnp.float32) + params["fc2_b"]


if __name__ == "__main__":
    # ConvNet(input_shape=(4, 16, 16), output_dim=8, layers=(32, 32, 64, 64))
    B, C_in, H, W = 2, 4, 16, 16
    output_dim = 8
    layers = (32, 32, 64, 64)

    key = jax.random.PRNGKey(0)
    keys = jax.random.split(key, 11)

    def init(k, shape, fan_in):
        return jax.random.normal(k, shape, jnp.float32) / jnp.sqrt(jnp.float32(fan_in))

    x = jax.random.normal(keys[0], (B, C_in, H, W), dtype=jnp.float32)
    params = {
        # Conv2d weights in PyTorch [Cout, Cin, kh, kw] layout.
        "w1": init(keys[1], (layers[0], C_in, 8, 8), C_in * 8 * 8),
        "b1": 0.1 * jax.random.normal(keys[2], (layers[0],), jnp.float32),
        "w2": init(keys[3], (layers[1], layers[0], 4, 4), layers[0] * 4 * 4),
        "b2": 0.1 * jax.random.normal(keys[4], (layers[1],), jnp.float32),
        "w3": init(keys[5], (layers[2], layers[1], 2, 2), layers[1] * 2 * 2),
        "b3": 0.1 * jax.random.normal(keys[6], (layers[2],), jnp.float32),
        # nn.Linear weights in PyTorch [out, in] layout.
        "fc1_w": init(keys[7], (layers[3], layers[2]), layers[2]),
        "fc1_b": 0.1 * jax.random.normal(keys[8], (layers[3],), jnp.float32),
        "fc2_w": init(keys[9], (output_dim, layers[3]), layers[3]),
        "fc2_b": 0.1 * jax.random.normal(keys[10], (output_dim,), jnp.float32),
    }

    weights, meta = prepare_convnet(params, (C_in, H, W), output_dim)  # one-time
    fwd = jax.jit(lambda w_, x_: convnet_forward(w_, x_, meta))
    out = jax.block_until_ready(fwd(weights, x))
    assert out.shape == (B, output_dim), out.shape

    # (a) Packing/kernel check: against a reference that uses the SAME bf16
    #     matmul-operand precision -> only f32 summation-order / bf16-ULP cast
    #     differences remain; a packing mistake would be O(0.1-1) off.
    ref_bf16 = jax.block_until_ready(_reference_forward(x, params, jnp.bfloat16))
    err_pack = float(jnp.max(jnp.abs(out - ref_bf16)))
    if not np.isfinite(err_pack) or err_pack > 1e-2:
        raise AssertionError(f"kernel deviates from bf16-operand reference "
                             f"(max err {err_pack})")
    # (b) Semantics check vs. the exact f32 PyTorch-equivalent reference; the
    #     generous tolerance only absorbs the deliberate bf16 operand rounding.
    ref_f32 = jax.block_until_ready(_reference_forward(x, params, jnp.float32))
    err_full = float(jnp.max(jnp.abs(out - ref_f32)))
    if not np.isfinite(err_full) or err_full > 2.5e-1:
        raise AssertionError(f"kernel deviates from f32 reference beyond expected "
                             f"bf16 drift (max err {err_full})")

    print("KERNEL_OK")
</pallas_src>

<mosaic_0001>
module attributes {stable_mosaic.version = 11 : i64} {
  func.func @_convnet_kernel(%arg0: i32, %arg1: memref<12x512xbf16, #tpu.memory_space<vmem>>, %arg2: memref<512x256xbf16, #tpu.memory_space<vmem>>, %arg3: memref<1x256xf32, #tpu.memory_space<vmem>>, %arg4: memref<1024x128xbf16, #tpu.memory_space<vmem>>, %arg5: memref<1x128xf32, #tpu.memory_space<vmem>>, %arg6: memref<256x128xbf16, #tpu.memory_space<vmem>>, %arg7: memref<1x128xf32, #tpu.memory_space<vmem>>, %arg8: memref<128x64xbf16, #tpu.memory_space<vmem>>, %arg9: memref<1x64xf32, #tpu.memory_space<vmem>>, %arg10: memref<64x128xbf16, #tpu.memory_space<vmem>>, %arg11: memref<1x128xf32, #tpu.memory_space<vmem>>, %arg12: memref<2x128xf32, #tpu.memory_space<vmem>>) attributes {dimension_semantics = [#tpu.dimension_semantics<parallel>], iteration_bounds = array<i64: 1>, scalar_prefetch = 0 : i64, scratch_operands = 0 : i64, tpu.core_type = #tpu.core_type<tc>, window_params = [{transform_indices = @transform_0, window_bounds = array<i64: 12, 512>}, {pipeline_mode = #tpu.pipeline_mode<synchronous>, transform_indices = @transform_1, window_bounds = array<i64: 512, 256>}, {pipeline_mode = #tpu.pipeline_mode<synchronous>, transform_indices = @transform_2, window_bounds = array<i64: 1, 256>}, {pipeline_mode = #tpu.pipeline_mode<synchronous>, transform_indices = @transform_3, window_bounds = array<i64: 1024, 128>}, {pipeline_mode = #tpu.pipeline_mode<synchronous>, transform_indices = @transform_4, window_bounds = array<i64: 1, 128>}, {pipeline_mode = #tpu.pipeline_mode<synchronous>, transform_indices = @transform_5, window_bounds = array<i64: 256, 128>}, {pipeline_mode = #tpu.pipeline_mode<synchronous>, transform_indices = @transform_6, window_bounds = array<i64: 1, 128>}, {pipeline_mode = #tpu.pipeline_mode<synchronous>, transform_indices = @transform_7, window_bounds = array<i64: 128, 64>}, {pipeline_mode = #tpu.pipeline_mode<synchronous>, transform_indices = @transform_8, window_bounds = array<i64: 1, 64>}, {pipeline_mode = #tpu.pipeline_mode<synchronous>, transform_indices = @transform_9, window_bounds = array<i64: 64, 128>}, {pipeline_mode = #tpu.pipeline_mode<synchronous>, transform_indices = @transform_10, window_bounds = array<i64: 1, 128>}, {transform_indices = @transform_11, window_bounds = array<i64: 2, 128>}]} {
    %c0 = arith.constant 0 : index
    %c0_0 = arith.constant 0 : index
    %0 = vector.load %arg1[%c0, %c0_0] : memref<12x512xbf16, #tpu.memory_space<vmem>>, vector<12x512xbf16>
    %c0_1 = arith.constant 0 : index
    %c0_2 = arith.constant 0 : index
    %1 = vector.load %arg2[%c0_1, %c0_2] : memref<512x256xbf16, #tpu.memory_space<vmem>>, vector<512x256xbf16>
    %cst = arith.constant dense<0.000000e+00> : vector<12x256xf32>
    %2 = tpu.matmul %0, %1, %cst {dimension_numbers = #tpu.dot_dimension_numbers<[1], [0], [0], [1], [0, 0, 1, 1], [], []>} : vector<12x512xbf16>, vector<512x256xbf16>, vector<12x256xf32> -> vector<12x256xf32>
    %c0_3 = arith.constant 0 : index
    %c0_4 = arith.constant 0 : index
    %3 = vector.load %arg3[%c0_3, %c0_4] : memref<1x256xf32, #tpu.memory_space<vmem>>, vector<1x256xf32>
    %4 = vector.broadcast %3 : vector<1x256xf32> to vector<12x256xf32>
    %5 = arith.addf %2, %4 : vector<12x256xf32>
    %cst_5 = arith.constant 0.000000e+00 : f32
    %6 = vector.broadcast %cst_5 : f32 to vector<12x256xf32>
    %7 = arith.cmpf ogt, %5, %6 : vector<12x256xf32>
    %cst_6 = arith.constant 0.00999999977 : f32
    %8 = vector.broadcast %cst_6 : f32 to vector<12x256xf32>
    %9 = arith.mulf %8, %5 : vector<12x256xf32>
    %10 = arith.select %7, %5, %9 : vector<12x256xi1>, vector<12x256xf32>
    %11 = vector.extract_strided_slice %10 {offsets = [0, 0], sizes = [1, 256], strides = [1, 1]} : vector<12x256xf32> to vector<1x256xf32>
    %12 = vector.extract_strided_slice %10 {offsets = [1, 0], sizes = [1, 256], strides = [1, 1]} : vector<12x256xf32> to vector<1x256xf32>
    %13 = vector.extract_strided_slice %10 {offsets = [2, 0], sizes = [1, 256], strides = [1, 1]} : vector<12x256xf32> to vector<1x256xf32>
    %14 = vector.extract_strided_slice %10 {offsets = [3, 0], sizes = [1, 256], strides = [1, 1]} : vector<12x256xf32> to vector<1x256xf32>
    %15 = tpu.concatenate %11, %12, %13, %14 in 1 : vector<1x256xf32>, vector<1x256xf32>, vector<1x256xf32>, vector<1x256xf32> -> vector<1x1024xf32>
    %16 = vector.extract_strided_slice %10 {offsets = [2, 0], sizes = [1, 256], strides = [1, 1]} : vector<12x256xf32> to vector<1x256xf32>
    %17 = vector.extract_strided_slice %10 {offsets = [3, 0], sizes = [1, 256], strides = [1, 1]} : vector<12x256xf32> to vector<1x256xf32>
    %18 = vector.extract_strided_slice %10 {offsets = [4, 0], sizes = [1, 256], strides = [1, 1]} : vector<12x256xf32> to vector<1x256xf32>
    %19 = vector.extract_strided_slice %10 {offsets = [5, 0], sizes = [1, 256], strides = [1, 1]} : vector<12x256xf32> to vector<1x256xf32>
    %20 = tpu.concatenate %16, %17, %18, %19 in 1 : vector<1x256xf32>, vector<1x256xf32>, vector<1x256xf32>, vector<1x256xf32> -> vector<1x1024xf32>
    %21 = vector.extract_strided_slice %10 {offsets = [6, 0], sizes = [1, 256], strides = [1, 1]} : vector<12x256xf32> to vector<1x256xf32>
    %22 = vector.extract_strided_slice %10 {offsets = [7, 0], sizes = [1, 256], strides = [1, 1]} : vector<12x256xf32> to vector<1x256xf32>
    %23 = vector.extract_strided_slice %10 {offsets = [8, 0], sizes = [1, 256], strides = [1, 1]} : vector<12x256xf32> to vector<1x256xf32>
    %24 = vector.extract_strided_slice %10 {offsets = [9, 0], sizes = [1, 256], strides = [1, 1]} : vector<12x256xf32> to vector<1x256xf32>
    %25 = tpu.concatenate %21, %22, %23, %24 in 1 : vector<1x256xf32>, vector<1x256xf32>, vector<1x256xf32>, vector<1x256xf32> -> vector<1x1024xf32>
    %26 = vector.extract_strided_slice %10 {offsets = [8, 0], sizes = [1, 256], strides = [1, 1]} : vector<12x256xf32> to vector<1x256xf32>
    %27 = vector.extract_strided_slice %10 {offsets = [9, 0], sizes = [1, 256], strides = [1, 1]} : vector<12x256xf32> to vector<1x256xf32>
    %28 = vector.extract_strided_slice %10 {offsets = [10, 0], sizes = [1, 256], strides = [1, 1]} : vector<12x256xf32> to vector<1x256xf32>
    %29 = vector.extract_strided_slice %10 {offsets = [11, 0], sizes = [1, 256], strides = [1, 1]} : vector<12x256xf32> to vector<1x256xf32>
    %30 = tpu.concatenate %26, %27, %28, %29 in 1 : vector<1x256xf32>, vector<1x256xf32>, vector<1x256xf32>, vector<1x256xf32> -> vector<1x1024xf32>
    %31 = tpu.concatenate %15, %20, %25, %30 in 0 : vector<1x1024xf32>, vector<1x1024xf32>, vector<1x1024xf32>, vector<1x1024xf32> -> vector<4x1024xf32>
    %32 = arith.truncf %31 : vector<4x1024xf32> to vector<4x1024xbf16>
    %c0_7 = arith.constant 0 : index
    %c0_8 = arith.constant 0 : index
    %33 = vector.load %arg4[%c0_7, %c0_8] : memref<1024x128xbf16, #tpu.memory_space<vmem>>, vector<1024x128xbf16>
    %cst_9 = arith.constant dense<0.000000e+00> : vector<4x128xf32>
    %34 = tpu.matmul %32, %33, %cst_9 {dimension_numbers = #tpu.dot_dimension_numbers<[1], [0], [0], [1], [0, 0, 1, 1], [], []>} : vector<4x1024xbf16>, vector<1024x128xbf16>, vector<4x128xf32> -> vector<4x128xf32>
    %c0_10 = arith.constant 0 : index
    %c0_11 = arith.constant 0 : index
    %35 = vector.load %arg5[%c0_10, %c0_11] : memref<1x128xf32, #tpu.memory_space<vmem>>, vector<1x128xf32>
    %36 = vector.broadcast %35 : vector<1x128xf32> to vector<4x128xf32>
    %37 = arith.addf %34, %36 : vector<4x128xf32>
    %cst_12 = arith.constant 0.000000e+00 : f32
    %38 = vector.broadcast %cst_12 : f32 to vector<4x128xf32>
    %39 = arith.cmpf ogt, %37, %38 : vector<4x128xf32>
    %cst_13 = arith.constant 0.00999999977 : f32
    %40 = vector.broadcast %cst_13 : f32 to vector<4x128xf32>
    %41 = arith.mulf %40, %37 : vector<4x128xf32>
    %42 = arith.select %39, %37, %41 : vector<4x128xi1>, vector<4x128xf32>
    %43 = vector.extract_strided_slice %42 {offsets = [0, 0], sizes = [1, 128], strides = [1, 1]} : vector<4x128xf32> to vector<1x128xf32>
    %44 = vector.extract_strided_slice %42 {offsets = [1, 0], sizes = [1, 128], strides = [1, 1]} : vector<4x128xf32> to vector<1x128xf32>
    %45 = tpu.concatenate %43, %44 in 1 : vector<1x128xf32>, vector<1x128xf32> -> vector<1x256xf32>
    %46 = vector.extract_strided_slice %42 {offsets = [2, 0], sizes = [1, 128], strides = [1, 1]} : vector<4x128xf32> to vector<1x128xf32>
    %47 = vector.extract_strided_slice %42 {offsets = [3, 0], sizes = [1, 128], strides = [1, 1]} : vector<4x128xf32> to vector<1x128xf32>
    %48 = tpu.concatenate %46, %47 in 1 : vector<1x128xf32>, vector<1x128xf32> -> vector<1x256xf32>
    %49 = tpu.concatenate %45, %48 in 0 : vector<1x256xf32>, vector<1x256xf32> -> vector<2x256xf32>
    %50 = arith.truncf %49 : vector<2x256xf32> to vector<2x256xbf16>
    %c0_14 = arith.constant 0 : index
    %c0_15 = arith.constant 0 : index
    %51 = vector.load %arg6[%c0_14, %c0_15] : memref<256x128xbf16, #tpu.memory_space<vmem>>, vector<256x128xbf16>
    %cst_16 = arith.constant dense<0.000000e+00> : vector<2x128xf32>
    %52 = tpu.matmul %50, %51, %cst_16 {dimension_numbers = #tpu.dot_dimension_numbers<[1], [0], [0], [1], [0, 0, 1, 1], [], []>} : vector<2x256xbf16>, vector<256x128xbf16>, vector<2x128xf32> -> vector<2x128xf32>
    %c0_17 = arith.constant 0 : index
    %c0_18 = arith.constant 0 : index
    %53 = vector.load %arg7[%c0_17, %c0_18] : memref<1x128xf32, #tpu.memory_space<vmem>>, vector<1x128xf32>
    %54 = vector.broadcast %53 : vector<1x128xf32> to vector<2x128xf32>
    %55 = arith.addf %52, %54 : vector<2x128xf32>
    %cst_19 = arith.constant 0.000000e+00 : f32
    %56 = vector.broadcast %cst_19 : f32 to vector<2x128xf32>
    %57 = arith.cmpf ogt, %55, %56 : vector<2x128xf32>
    %cst_20 = arith.constant 0.00999999977 : f32
    %58 = vector.broadcast %cst_20 : f32 to vector<2x128xf32>
    %59 = arith.mulf %58, %55 : vector<2x128xf32>
    %60 = arith.select %57, %55, %59 : vector<2x128xi1>, vector<2x128xf32>
    %61 = arith.truncf %60 : vector<2x128xf32> to vector<2x128xbf16>
    %c0_21 = arith.constant 0 : index
    %c0_22 = arith.constant 0 : index
    %62 = vector.load %arg8[%c0_21, %c0_22] : memref<128x64xbf16, #tpu.memory_space<vmem>>, vector<128x64xbf16>
    %cst_23 = arith.constant dense<0.000000e+00> : vector<2x64xf32>
    %63 = tpu.matmul %61, %62, %cst_23 {dimension_numbers = #tpu.dot_dimension_numbers<[1], [0], [0], [1], [0, 0, 1, 1], [], []>} : vector<2x128xbf16>, vector<128x64xbf16>, vector<2x64xf32> -> vector<2x64xf32>
    %c0_24 = arith.constant 0 : index
    %c0_25 = arith.constant 0 : index
    %64 = vector.load %arg9[%c0_24, %c0_25] : memref<1x64xf32, #tpu.memory_space<vmem>>, vector<1x64xf32>
    %65 = vector.broadcast %64 : vector<1x64xf32> to vector<2x64xf32>
    %66 = arith.addf %63, %65 : vector<2x64xf32>
    %cst_26 = arith.constant 0.000000e+00 : f32
    %67 = vector.broadcast %cst_26 : f32 to vector<2x64xf32>
    %68 = arith.maximumf %66, %67 : vector<2x64xf32>
    %69 = arith.truncf %68 : vector<2x64xf32> to vector<2x64xbf16>
    %c0_27 = arith.constant 0 : index
    %c0_28 = arith.constant 0 : index
    %70 = vector.load %arg10[%c0_27, %c0_28] : memref<64x128xbf16, #tpu.memory_space<vmem>>, vector<64x128xbf16>
    %cst_29 = arith.constant dense<0.000000e+00> : vector<2x128xf32>
    %71 = tpu.matmul %69, %70, %cst_29 {dimension_numbers = #tpu.dot_dimension_numbers<[1], [0], [0], [1], [0, 0, 1, 1], [], []>} : vector<2x64xbf16>, vector<64x128xbf16>, vector<2x128xf32> -> vector<2x128xf32>
    %c0_30 = arith.constant 0 : index
    %c0_31 = arith.constant 0 : index
    %72 = vector.load %arg11[%c0_30, %c0_31] : memref<1x128xf32, #tpu.memory_space<vmem>>, vector<1x128xf32>
    %73 = vector.broadcast %72 : vector<1x128xf32> to vector<2x128xf32>
    %74 = arith.addf %71, %73 : vector<2x128xf32>
    %c0_32 = arith.constant 0 : index
    %c0_33 = arith.constant 0 : index
    %75 = vector.load %arg12[%c0_32, %c0_33] : memref<2x128xf32, #tpu.memory_space<vmem>>, vector<2x128xf32>
    tpu.vector_store %arg12[%c0_32, %c0_33], %74 {strides = array<i32>} : memref<2x128xf32, #tpu.memory_space<vmem>>, vector<2x128xf32>,
    return
  }
  func.func @transform_0(%arg0: i32) -> (i32, i32) {
    %c0_i32 = arith.constant 0 : i32
    %c0_i32_0 = arith.constant 0 : i32
    return %arg0, %c0_i32 : i32, i32
  }
  func.func @transform_1(%arg0: i32) -> (i32, i32) {
    %c0_i32 = arith.constant 0 : i32
    %c0_i32_0 = arith.constant 0 : i32
    %c0_i32_1 = arith.constant 0 : i32
    return %c0_i32, %c0_i32_0 : i32, i32
  }
  func.func @transform_2(%arg0: i32) -> (i32, i32) {
    %c0_i32 = arith.constant 0 : i32
    %c0_i32_0 = arith.constant 0 : i32
    %c0_i32_1 = arith.constant 0 : i32
    return %c0_i32, %c0_i32_0 : i32, i32
  }
  func.func @transform_3(%arg0: i32) -> (i32, i32) {
    %c0_i32 = arith.constant 0 : i32
    %c0_i32_0 = arith.constant 0 : i32
    %c0_i32_1 = arith.constant 0 : i32
    return %c0_i32, %c0_i32_0 : i32, i32
  }
  func.func @transform_4(%arg0: i32) -> (i32, i32) {
    %c0_i32 = arith.constant 0 : i32
    %c0_i32_0 = arith.constant 0 : i32
    %c0_i32_1 = arith.constant 0 : i32
    return %c0_i32, %c0_i32_0 : i32, i32
  }
  func.func @transform_5(%arg0: i32) -> (i32, i32) {
    %c0_i32 = arith.constant 0 : i32
    %c0_i32_0 = arith.constant 0 : i32
    %c0_i32_1 = arith.constant 0 : i32
    return %c0_i32, %c0_i32_0 : i32, i32
  }
  func.func @transform_6(%arg0: i32) -> (i32, i32) {
    %c0_i32 = arith.constant 0 : i32
    %c0_i32_0 = arith.constant 0 : i32
    %c0_i32_1 = arith.constant 0 : i32
    return %c0_i32, %c0_i32_0 : i32, i32
  }
  func.func @transform_7(%arg0: i32) -> (i32, i32) {
    %c0_i32 = arith.constant 0 : i32
    %c0_i32_0 = arith.constant 0 : i32
    %c0_i32_1 = arith.constant 0 : i32
    return %c0_i32, %c0_i32_0 : i32, i32
  }
  func.func @transform_8(%arg0: i32) -> (i32, i32) {
    %c0_i32 = arith.constant 0 : i32
    %c0_i32_0 = arith.constant 0 : i32
    %c0_i32_1 = arith.constant 0 : i32
    return %c0_i32, %c0_i32_0 : i32, i32
  }
  func.func @transform_9(%arg0: i32) -> (i32, i32) {
    %c0_i32 = arith.constant 0 : i32
    %c0_i32_0 = arith.constant 0 : i32
    %c0_i32_1 = arith.constant 0 : i32
    return %c0_i32, %c0_i32_0 : i32, i32
  }
  func.func @transform_10(%arg0: i32) -> (i32, i32) {
    %c0_i32 = arith.constant 0 : i32
    %c0_i32_0 = arith.constant 0 : i32
    %c0_i32_1 = arith.constant 0 : i32
    return %c0_i32, %c0_i32_0 : i32, i32
  }
  func.func @transform_11(%arg0: i32) -> (i32, i32) {
    %c0_i32 = arith.constant 0 : i32
    %c0_i32_0 = arith.constant 0 : i32
    return %arg0, %c0_i32 : i32, i32
  }
}

</mosaic_0001>

<bundles_post_ra>
// kernel: _lambda_.1
= control target key start
LH: loop header
LB: loop body
LE: loop exit
PB: predicated region body
PF: predicated region fallthrough
CT: control target
= control target key end

     0   :  { %s2932_s0 = inlined_call_operand.vmem [shape: bf16[12,512], index: 0, kind: input, shape index: {}]   ;;  %s2933_s1 = inlined_call_operand.vmem [shape: bf16[512,256], index: 1, kind: input, shape index: {}]   ;;  %s2934_s2 = inlined_call_operand.vmem [shape: f32[1,256], index: 2, kind: input, shape index: {}]   ;;  %s2935_s3 = inlined_call_operand.vmem [shape: bf16[1024,128], index: 3, kind: input, shape index: {}]   ;;  %s2936_s4 = inlined_call_operand.vmem [shape: f32[1,128], index: 4, kind: input, shape index: {}]   ;;  %s2937_s5 = inlined_call_operand.vmem [shape: bf16[256,128], index: 5, kind: input, shape index: {}]   ;;  %s2938_s6 = inlined_call_operand.vmem [shape: f32[1,128], index: 6, kind: input, shape index: {}]   ;;  %s2939_s7 = inlined_call_operand.vmem [shape: bf16[128,64], index: 7, kind: input, shape index: {}]   ;;  %s2940_s8 = inlined_call_operand.vmem [shape: f32[1,64], index: 8, kind: input, shape index: {}]   ;;  %s2941_s9 = inlined_call_operand.vmem [shape: bf16[64,128], index: 9, kind: input, shape index: {}]   ;;  %s2942_s10 = inlined_call_operand.vmem [shape: f32[1,128], index: 10, kind: input, shape index: {}]   ;;  %s2943_s11 = inlined_call_operand.hbm [shape: f32[2,128], index: 11, kind: output, shape index: {}]  }
   0x1   :  { %v2074_v0 = vld [vmem:[%s2933_s1 + $0x4] ss:$8 sps:$4 sm:$0xff]   ;;  %v2076_v1 = vld [vmem:[%s2933_s1] ss:$8 sps:$4 sm:$0xff]   ;;  %v2077_v2 = vld [vmem:[%s2933_s1 + $0x14] ss:$8 sps:$4 sm:$0xff]  }
   0x2   :  { %460 = vmatprep.subr.bf16.mxu0 %v2074_v0  ;;  %v2079_v3 = vld [vmem:[%s2933_s1 + $0x10] ss:$8 sps:$4 sm:$0xff]   ;;  %v2080_v4 = vld [vmem:[%s2933_s1 + $0x24] ss:$8 sps:$4 sm:$0xff]   ;;  %v2082_v5 = vld [vmem:[%s2933_s1 + $0x20] ss:$8 sps:$4 sm:$0xff]  }
   0x3   :  { %461 = vmatpush1.bf16.msra.mxu0 %v2076_v1  ;;  %v2083_v6 = vld [vmem:[%s2933_s1 + $0x34] ss:$8 sps:$4 sm:$0xff]   ;;  %v2085_v7 = vld [vmem:[%s2933_s1 + $0x30] ss:$8 sps:$4 sm:$0xff]   ;;  %v2086_v8 = vld [vmem:[%s2933_s1 + $0x44] ss:$8 sps:$4 sm:$0xff]  }
   0x4   :  { %462 = vmatprep.subr.bf16.mxu0 %v2077_v2  ;;  %v2088_v9 = vld [vmem:[%s2933_s1 + $0x40] ss:$8 sps:$4 sm:$0xff]   ;;  %v2089_v10 = vld [vmem:[%s2933_s1 + $0x54] ss:$8 sps:$4 sm:$0xff]   ;;  %v2091_v11 = vld [vmem:[%s2933_s1 + $0x50] ss:$8 sps:$4 sm:$0xff]  }
   0x5   :  { %v2092_v12 = vld [vmem:[%s2933_s1 + $0x64] ss:$8 sps:$4 sm:$0xff]   ;;  %v2094_v14 = vld [vmem:[%s2933_s1 + $0x60] ss:$8 sps:$4 sm:$0xff]   ;;  %v2095_v15 = vld [vmem:[%s2933_s1 + $0x74] ss:$8 sps:$4 sm:$0xff]  }
   0x6   :  { %v2124_v13 = vld [vmem:[%s2932_s0 + $0x4] ss:$16 sps:$4 sm:$0x3f]   ;;  %v2097_v16 = vld [vmem:[%s2933_s1 + $0x70] ss:$8 sps:$4 sm:$0xff]   ;;  %v2178_v30 = vld [vmem:[%s2935_s3 + $0x48] sm:$0xff]  }
   0x7   :  { %463 = vmatpush1.bf16.msra.mxu0 %v2079_v3  ;;  %492 = vmatprep.mubr.bf16.mxu0 %v2124_v13  ;;  %v2098_v17 = vld [vmem:[%s2933_s1 + $0x84] ss:$8 sps:$4 sm:$0xff]   ;;  %v2100_v18 = vld [vmem:[%s2933_s1 + $0x80] ss:$8 sps:$4 sm:$0xff]   ;;  %v2101_v19 = vld [vmem:[%s2933_s1 + $0x94] ss:$8 sps:$4 sm:$0xff]  }
   0x8   :  { %464 = vmatprep.subr.bf16.mxu0 %v2080_v4  ;;  %v2103_v20 = vld [vmem:[%s2933_s1 + $0x90] ss:$8 sps:$4 sm:$0xff]   ;;  %v2104_v21 = vld [vmem:[%s2933_s1 + $0xa4] ss:$8 sps:$4 sm:$0xff]   ;;  %v2106_v22 = vld [vmem:[%s2933_s1 + $0xa0] ss:$8 sps:$4 sm:$0xff]  }
   0x9   :  { %v2107_v23 = vld [vmem:[%s2933_s1 + $0xb4] ss:$8 sps:$4 sm:$0xff]   ;;  %v2109_v24 = vld [vmem:[%s2933_s1 + $0xb0] ss:$8 sps:$4 sm:$0xff]   ;;  %v2110_v25 = vld [vmem:[%s2933_s1 + $0xc4] ss:$8 sps:$4 sm:$0xff]  }
   0xa   :  { %v2112_v26 = vld [vmem:[%s2933_s1 + $0xc0] ss:$8 sps:$4 sm:$0xff]   ;;  %v2113_v27 = vld [vmem:[%s2933_s1 + $0xd4] ss:$8 sps:$4 sm:$0xff]   ;;  %v2115_v33 = vld [vmem:[%s2933_s1 + $0xd0] ss:$8 sps:$4 sm:$0xff]  }
   0xb   :  { %465 = vmatpush1.bf16.msra.mxu0 %v2082_v5  ;;  %v2176_v28 = vld [vmem:[%s2935_s3 + $0x40] sm:$0xff]   ;;  %v2179_v31 = vld [vmem:[%s2935_s3 + $0x8] sm:$0xff]   ;;  %v2180_v32 = vld [vmem:[%s2935_s3 + $0x50] sm:$0xff]  }
   0xc   :  { %466 = vmatprep.subr.bf16.mxu0 %v2083_v6  ;;  %v2177_v29 = vld [vmem:[%s2935_s3] sm:$0xff]   ;;  %1907 = vmatprep.subr.bf16.mxu1 %v2176_v28  ;;  %v2181_v36 = vld [vmem:[%s2935_s3 + $0x10] sm:$0xff]   ;;  %v2182_v38 = vld [vmem:[%s2935_s3 + $0x58] sm:$0xff]  }
   0xd   :  { %1908 = vmatpush3.bf16.msra.mxu1 %v2177_v29  ;;  %v2116_v34 = vld [vmem:[%s2933_s1 + $0xe4] ss:$8 sps:$4 sm:$0xff]   ;;  %v2118_v35 = vld [vmem:[%s2933_s1 + $0xe0] ss:$8 sps:$4 sm:$0xff]   ;;  %v2119_v37 = vld [vmem:[%s2933_s1 + $0xf4] ss:$8 sps:$4 sm:$0xff]  }
   0xe   :  { %1909 = vmatprep.subr.bf16.mxu1 %v2178_v30  ;;  %v2183_v39 = vld [vmem:[%s2935_s3 + $0x18] sm:$0xff]   ;;  %v2184_v40 = vld [vmem:[%s2935_s3 + $0x60] sm:$0xff]  }
   0xf   :  { %467 = vmatpush1.bf16.msra.mxu0 %v2085_v7  ;;  %v2121_v41 = vld [vmem:[%s2933_s1 + $0xf0] ss:$8 sps:$4 sm:$0xff]   ;;  %v2127_v42 = vld [vmem:[%s2933_s1 + $0x104] ss:$8 sps:$4 sm:$0xff]   ;;  %v2125_v45 = vld [vmem:[%s2933_s1 + $0x100] ss:$8 sps:$4 sm:$0xff]  }
  0x10   :  { %468 = vmatprep.subr.bf16.mxu0 %v2086_v8  ;;  %v2185_v43 = vld [vmem:[%s2935_s3 + $0x20] sm:$0xff]   ;;  %v2175_v46 = vld [vmem:[%s2932_s0 + $0xc] ss:$16 sps:$4 sm:$0x3f]   ;;  %v2128_v48 = vld [vmem:[%s2933_s1 + $0x110] ss:$8 sps:$4 sm:$0xff]  }
  0x11   :  { %1910 = vmatpush3.bf16.msra.mxu1 %v2179_v31  ;;  %v2122_v44 = vld [vmem:[%s2932_s0] ss:$16 sps:$4 sm:$0x3f]   ;;  %v2130_v47 = vld [vmem:[%s2933_s1 + $0x114] ss:$8 sps:$4 sm:$0xff]  }
  0x12   :  { %1911 = vmatprep.subr.bf16.mxu1 %v2180_v32  ;;  %v2133_v49 = vld [vmem:[%s2933_s1 + $0x124] ss:$8 sps:$4 sm:$0xff]   ;;  %v2131_v50 = vld [vmem:[%s2933_s1 + $0x120] ss:$8 sps:$4 sm:$0xff]   ;;  %v2136_v51 = vld [vmem:[%s2933_s1 + $0x134] ss:$8 sps:$4 sm:$0xff]  }
  0x13   :  { %469 = vmatpush1.bf16.msra.mxu0 %v2088_v9  ;;  %v2134_v52 = vld [vmem:[%s2933_s1 + $0x130] ss:$8 sps:$4 sm:$0xff]   ;;  %v2139_v53 = vld [vmem:[%s2933_s1 + $0x144] ss:$8 sps:$4 sm:$0xff]   ;;  %v2137_v54 = vld [vmem:[%s2933_s1 + $0x140] ss:$8 sps:$4 sm:$0xff]  }
  0x14   :  { %470 = vmatprep.subr.bf16.mxu0 %v2089_v10  ;;  %v2142_v55 = vld [vmem:[%s2933_s1 + $0x154] ss:$8 sps:$4 sm:$0xff]   ;;  %v2140_v56 = vld [vmem:[%s2933_s1 + $0x150] ss:$8 sps:$4 sm:$0xff]   ;;  %v2145_v57 = vld [vmem:[%s2933_s1 + $0x164] ss:$8 sps:$4 sm:$0xff]  }
  0x15   :  { %1912 = vmatpush3.bf16.msra.mxu1 %v2181_v36  ;;  %v2143_v58 = vld [vmem:[%s2933_s1 + $0x160] ss:$8 sps:$4 sm:$0xff]   ;;  %v2148_v59 = vld [vmem:[%s2933_s1 + $0x174] ss:$8 sps:$4 sm:$0xff]   ;;  %v2146_v60 = vld [vmem:[%s2933_s1 + $0x170] ss:$8 sps:$4 sm:$0xff]  }
  0x16   :  { %1913 = vmatprep.subr.bf16.mxu1 %v2182_v38  ;;  %v2151_v61 = vld [vmem:[%s2933_s1 + $0x184] ss:$8 sps:$4 sm:$0xff]   ;;  %v2149_v62 = vld [vmem:[%s2933_s1 + $0x180] ss:$8 sps:$4 sm:$0xff]   ;;  %v2154_v63 = vld [vmem:[%s2933_s1 + $0x194] ss:$8 sps:$4 sm:$0xff]  }
  0x17   :  { %471 = vmatpush1.bf16.msra.mxu0 %v2091_v11  ;;  %v2152_v0 = vld [vmem:[%s2933_s1 + $0x190] ss:$8 sps:$4 sm:$0xff]   ;;  %v2157_v1 = vld [vmem:[%s2933_s1 + $0x1a4] ss:$8 sps:$4 sm:$0xff]   ;;  %v2155_v2 = vld [vmem:[%s2933_s1 + $0x1a0] ss:$8 sps:$4 sm:$0xff]  }
  0x18   :  { %472 = vmatprep.subr.bf16.mxu0 %v2092_v12  ;;  %v2160_v3 = vld [vmem:[%s2933_s1 + $0x1b4] ss:$8 sps:$4 sm:$0xff]   ;;  %v2158_v4 = vld [vmem:[%s2933_s1 + $0x1b0] ss:$8 sps:$4 sm:$0xff]   ;;  %v2163_v5 = vld [vmem:[%s2933_s1 + $0x1c4] ss:$8 sps:$4 sm:$0xff]  }
  0x19   :  { %1914 = vmatpush3.bf16.msra.mxu1 %v2183_v39  ;;  %v2161_v6 = vld [vmem:[%s2933_s1 + $0x1c0] ss:$8 sps:$4 sm:$0xff]  }
  0x1a   :  { %1915 = vmatprep.subr.bf16.mxu1 %v2184_v40 }
  0x1b   :  { %473 = vmatpush1.bf16.msra.mxu0 %v2094_v14 }
  0x1c   :  { %474 = vmatprep.subr.bf16.mxu0 %v2095_v15 }
  0x1d   :  { %1916 = vmatpush3.bf16.msra.mxu1 %v2185_v43 }
  0x1f   :  { %475 = vmatpush1.bf16.msra.mxu0 %v2097_v16 }
  0x20   :  { %476 = vmatprep.subr.bf16.mxu0 %v2098_v17 }
  0x23   :  { %477 = vmatpush1.bf16.msra.mxu0 %v2100_v18 }
  0x24   :  { %478 = vmatprep.subr.bf16.mxu0 %v2101_v19 }
  0x27   :  { %479 = vmatpush1.bf16.msra.mxu0 %v2103_v20 }
  0x28   :  { %480 = vmatprep.subr.bf16.mxu0 %v2104_v21 }
  0x2b   :  { %481 = vmatpush1.bf16.msra.mxu0 %v2106_v22 }
  0x2c   :  { %482 = vmatprep.subr.bf16.mxu0 %v2107_v23 }
  0x2f   :  { %483 = vmatpush1.bf16.msra.mxu0 %v2109_v24 }
  0x30   :  { %484 = vmatprep.subr.bf16.mxu0 %v2110_v25 }
  0x33   :  { %485 = vmatpush1.bf16.msra.mxu0 %v2112_v26 }
  0x34   :  { %486 = vmatprep.subr.bf16.mxu0 %v2113_v27 }
  0x37   :  { %487 = vmatpush1.bf16.msra.mxu0 %v2115_v33 }
  0x38   :  { %488 = vmatprep.subr.bf16.mxu0 %v2116_v34 }
  0x3b   :  { %489 = vmatpush1.bf16.msra.mxu0 %v2118_v35 }
  0x3c   :  { %490 = vmatprep.subr.bf16.mxu0 %v2119_v37 }
  0x3f   :  { %491 = vmatpush1.bf16.msra.mxu0 %v2121_v41 }
  0x40   :  { %503 = vmatprep.subr.bf16.mxu0 %v2127_v42 }
  0x42   :  { %493 = vmatmul.mubr.bf16.vlgmr.msra.gmra.mrb[0].mxu0 %v2122_v44 }
  0x43   :  { %504 = vmatpush1.bf16.msra.mxu0 %v2125_v45  ;;  %535 = vmatprep.mubr.bf16.mxu0 %v2175_v46 }
  0x44   :  { %505 = vmatprep.subr.bf16.mxu0 %v2130_v47 }
  0x47   :  { %506 = vmatpush1.bf16.msra.mxu0 %v2128_v48 }
  0x48   :  { %507 = vmatprep.subr.bf16.mxu0 %v2133_v49 }
  0x4b   :  { %508 = vmatpush1.bf16.msra.mxu0 %v2131_v50 }
  0x4c   :  { %509 = vmatprep.subr.bf16.mxu0 %v2136_v51 }
  0x4f   :  { %510 = vmatpush1.bf16.msra.mxu0 %v2134_v52 }
  0x50   :  { %511 = vmatprep.subr.bf16.mxu0 %v2139_v53 }
  0x53   :  { %512 = vmatpush1.bf16.msra.mxu0 %v2137_v54 }
  0x54   :  { %513 = vmatprep.subr.bf16.mxu0 %v2142_v55 }
  0x57   :  { %514 = vmatpush1.bf16.msra.mxu0 %v2140_v56 }
  0x58   :  { %515 = vmatprep.subr.bf16.mxu0 %v2145_v57 }
  0x5b   :  { %516 = vmatpush1.bf16.msra.mxu0 %v2143_v58 }
  0x5c   :  { %517 = vmatprep.subr.bf16.mxu0 %v2148_v59 }
  0x5f   :  { %518 = vmatpush1.bf16.msra.mxu0 %v2146_v60 }
  0x60   :  { %519 = vmatprep.subr.bf16.mxu0 %v2151_v61 }
  0x63   :  { %520 = vmatpush1.bf16.msra.mxu0 %v2149_v62 }
  0x64   :  { %521 = vmatprep.subr.bf16.mxu0 %v2154_v63 }
  0x67   :  { %522 = vmatpush1.bf16.msra.mxu0 %v2152_v0 }
  0x68   :  { %523 = vmatprep.subr.bf16.mxu0 %v2157_v1 }
  0x6b   :  { %524 = vmatpush1.bf16.msra.mxu0 %v2155_v2 }
  0x6c   :  { %525 = vmatprep.subr.bf16.mxu0 %v2160_v3 }
  0x6f   :  { %526 = vmatpush1.bf16.msra.mxu0 %v2158_v4 }
  0x70   :  { %16 = vsyncpa [#allocation3], 0  ;;  %527 = vmatprep.subr.bf16.mxu0 %v2163_v5  ;;  %v2166_v7 = vld [vmem:[%s2933_s1 + $0x1d4] ss:$8 sps:$4 sm:$0xff]   ;;  %v2164_v8 = vld [vmem:[%s2933_s1 + $0x1d0] ss:$8 sps:$4 sm:$0xff]   ;;  %v110_v21 = vlaneseq }
  0x71   :  { %v2169_v9 = vld [vmem:[%s2933_s1 + $0x1e4] ss:$8 sps:$4 sm:$0xff]   ;;  %v2167_v10 = vld [vmem:[%s2933_s1 + $0x1e0] ss:$8 sps:$4 sm:$0xff]   ;;  %v2172_v11 = vld [vmem:[%s2933_s1 + $0x1f4] ss:$8 sps:$4 sm:$0xff]  }
  0x72   :  { %v2170_v12 = vld [vmem:[%s2933_s1 + $0x1f0] ss:$8 sps:$4 sm:$0xff]   ;;  %v2186_v14 = vld [vmem:[%s2935_s3 + $0x68] sm:$0xff]   ;;  %v2192_v20 = vld [vmem:[%s2935_s3 + $0xc0] sm:$0xff]   ;;  %v111_v22 = vshrl.u32 %v110_v21, 7  ;;  %vm624_vm2 = vcmask 1040384  }
  0x73   :  { %528 = vmatpush1.bf16.msra.mxu0 %v2161_v6  ;;  %v2173_v13 = vld [vmem:[%s2932_s0 + $0x8] ss:$16 sps:$4 sm:$0x3f]   ;;  %1917 = vmatprep.subr.bf16.mxu1 %v2186_v14  ;;  %v2188_v16 = vld [vmem:[%s2935_s3 + $0x70] sm:$0xff]   ;;  %v108_v24 = vld [vmem:[%s2934_s2] sm:$0x3] }
  0x74   :  { %529 = vmatprep.subr.bf16.mxu0 %v2166_v7  ;;  %v2187_v15 = vld [vmem:[%s2935_s3 + $0x28] sm:$0xff]   ;;  %v2189_v17 = vld [vmem:[%s2935_s3 + $0x30] sm:$0xff]   ;;  %v2190_v18 = vld [vmem:[%s2935_s3 + $0x78] sm:$0xff]   ;;  %v112_v23 = vsub.s32 0, %v111_v22  ;;  %v116_v25 = vsub.s32 1, %v111_v22  ;;  %vm633_vm3 = vcmask 1041408  }
  0x75   :  { %1918 = vmatpush3.bf16.msra.mxu1 %v2187_v15  ;;  %v2191_v19 = vld [vmem:[%s2935_s3 + $0x38] sm:$0xff]   ;;  %vm642_vm5 = vcmask 1042432   ;;  %vm2293_vm8 = vmmov 0   ;;  %vm1681_vm10 = vcmask 523264  }
  0x76   :  { %1919 = vmatprep.subr.bf16.mxu1 %v2188_v16  ;;  %v113_v26 = vrot.slane %v108_v24, %v112_v23  ;;  %v117_v27 = vrot.slane %v108_v24, %v116_v25 }
  0x77   :  { %530 = vmatpush1.bf16.msra.mxu0 %v2164_v8 }
  0x78   :  { %531 = vmatprep.subr.bf16.mxu0 %v2169_v9 }
  0x79   :  { %1920 = vmatpush3.bf16.msra.mxu1 %v2189_v17  ;;  %v2194_v17 = vld [vmem:[%s2935_s3 + $0xc8] sm:$0xff]  }
  0x7a   :  { %1921 = vmatprep.subr.bf16.mxu1 %v2190_v18 }
  0x7b   :  { %532 = vmatpush1.bf16.msra.mxu0 %v2167_v10 }
  0x7c   :  { %533 = vmatprep.subr.bf16.mxu0 %v2172_v11 }
  0x7d   :  { %1922 = vmatpush3.bf16.msra.mxu1 %v2191_v19 }
  0x7e   :  { %1929 = vmatprep.subr.bf16.mxu1 %v2192_v20 }
  0x7f   :  { %534 = vmatpush1.bf16.msra.mxu0 %v2170_v12  ;;  %v2193_v12 = vld [vmem:[%s2935_s3 + $0x80] sm:$0xff]  }
  0x82   :  { %536 = vmatmul.mubr.bf16.vlgmr.msra.gmra.mrb[0].mxu0 %v2173_v13 }
 0x155   :  { %v537_v28 = vpop.f32.mrb[0].mxu0 }
 0x156   :  { %v2063_v29 = vadd.f32 %v537_v28, %v113_v26  ;;  %v539_v30 = vpop.f32.mrb[1].mxu0 }
 0x157   :  { %v2064_v31 = vadd.f32 %v539_v30, %v117_v27  ;;  %v541_v32 = vpop.f32.mrb[2].mxu0 }
 0x158   :  { %vm546_vm0 = vcmp.gt.f32.partialorder %v2063_v29, 0.0  ;;  %v550_v33 = vmul.f32 0.01, %v2063_v29  ;;  %v2065_v34 = vadd.f32 %v541_v32, %v113_v26  ;;  %v543_v35 = vpop.f32.mrb[3].mxu0 }
 0x159   :  { %vm547_vm1 = vcmp.gt.f32.partialorder %v2064_v31, 0.0  ;;  %v551_v36 = vmul.f32 0.01, %v2064_v31  ;;  %v2066_v39 = vadd.f32 %v543_v35, %v117_v27 }
 0x15a   :  { %v2613_v37 = vsel %vm546_vm0, %v2063_v29, %v550_v33  ;;  %vm548_vm4 = vcmp.gt.f32.partialorder %v2065_v34, 0.0  ;;  %v552_v38 = vmul.f32 0.01, %v2065_v34  ;;  %v2195_v29 = vld [vmem:[%s2935_s3 + $0x88] sm:$0xff]   ;;  %v2196_v33 = vld [vmem:[%s2935_s3 + $0xd0] sm:$0xff]  }
 0x15b   :  { %v564_v40 = vrot.slane %v2613_v37, 2  ;;  %v568_v41 = vrot.slane %v2613_v37, 3  ;;  %v2617_v42 = vsel %vm547_vm1, %v2064_v31, %v551_v36  ;;  %v560_v43 = vrot.slane %v2613_v37, 1 }
 0x15c   :  { %v561_v44 = vrot.slane %v2617_v42, 1  ;;  %v565_v45 = vrot.slane %v2617_v42, 2  ;;  %v556_v46 = vsel %vm548_vm4, %v2065_v34, %v552_v38  ;;  %v569_v48 = vrot.slane %v2617_v42, 3 }
 0x15d   :  { %v582_v47 = vrot.slane %v564_v40, 1  ;;  %v574_v49 = vrot.slane %v556_v46, 2  ;;  %v576_v50 = vrot.slane %v556_v46, 3  ;;  %v584_v51 = vrot.slane %v568_v41, 1 }
 0x15e   :  { %vm549_vm6 = vcmp.gt.f32.partialorder %v2066_v39, 0.0  ;;  %v553_v52 = vmul.f32 0.01, %v2066_v39  ;;  %v593_v53 = vrot.slane %v2617_v42, 4  ;;  %v1808_v56 = vrot.slane %v556_v46, 6 }
 0x15f   :  { %v596_v54 = vrot.slane %v574_v49, 4  ;;  %v598_v55 = vrot.slane %v576_v50, 4  ;;  %v612_v57 = vrot.slane %v574_v49, 5  ;;  %v626_v59 = vsel %vm624_vm2, %v2617_v42, %v561_v44  ;;  %v2203_v49 = vld [vmem:[%s2935_s3 + $0xa8] sm:$0xff]  }
 0x160   :  { %v557_v58 = vsel %vm549_vm6, %v2066_v39, %v553_v52  ;;  %v592_v60 = vrot.slane %v2613_v37, 4  ;;  %v608_v61 = vrot.slane %v556_v46, 5  ;;  %v635_v1 = vsel %vm633_vm3, %v626_v59, %v593_v53  ;;  %v2200_v46 = vld [vmem:[%s2935_s3 + $0xe0] sm:$0xff]   ;;  %v2206_v52 = vld [vmem:[%s2935_s3 + $0xf8] sm:$0xff]   ;;  %v2211_v59 = vld [vmem:[%s2935_s3 + $0x108] sm:$0xff]  }
 0x161   :  { %v575_v62 = vrot.slane %v557_v58, 2  ;;  %v577_v63 = vrot.slane %v557_v58, 3  ;;  %v609_v0 = vrot.slane %v557_v58, 5  ;;  %v625_v2 = vsel %vm624_vm2, %v2613_v37, %v560_v43  ;;  %v2198_v37 = vld [vmem:[%s2935_s3 + $0xd8] sm:$0xff]  }
 0x162   :  { %v581_v3 = vrot.slane %v561_v44, 1  ;;  %v595_v4 = vrot.slane %v561_v44, 4  ;;  %v1809_v5 = vrot.slane %v557_v58, 6  ;;  %v634_v7 = vsel %vm633_vm3, %v625_v2, %v592_v60  ;;  %v2207_v53 = vld [vmem:[%s2935_s3 + $0xb8] sm:$0xff]   ;;  %v2212_v60 = vld [vmem:[%s2935_s3 + $0x150] sm:$0xff]   ;;  %v2218_v2 = vld [vmem:[%s2935_s3 + $0x168] sm:$0xff]  }
 0x163   :  { %v644_v6 = vsel %vm642_vm5, %v635_v1, %v609_v0  ;;  %v580_v8 = vrot.slane %v560_v43, 1  ;;  %v594_v9 = vrot.slane %v560_v43, 4  ;;  %v643_v11 = vsel %vm642_vm5, %v634_v7, %v608_v61  ;;  %v2213_v61 = vld [vmem:[%s2935_s3 + $0x110] sm:$0xff]   ;;  %v2216_v0 = vld [vmem:[%s2935_s3 + $0x160] sm:$0xff]   ;;  %v2223_v7 = vld [vmem:[%s2935_s3 + $0x138] sm:$0xff]  }
 0x164   :  { %v652_v10 = vpack.c.bf16 %v644_v6, %v644_v6  ;;  %v628_v13 = vsel %vm624_vm2, %v561_v44, %v581_v3  ;;  %v583_v14 = vrot.slane %v565_v45, 1  ;;  %v651_v15 = vpack.c.bf16 %v643_v11, %v643_v11  ;;  %v2217_v1 = vld [vmem:[%s2935_s3 + $0x120] sm:$0xff]   ;;  %v2219_v3 = vld [vmem:[%s2935_s3 + $0x128] sm:$0xff]   ;;  %v2222_v6 = vld [vmem:[%s2935_s3 + $0x178] sm:$0xff]  }
 0x165   :  { %v637_v16 = vsel %vm633_vm3, %v628_v13, %v595_v4  ;;  %v627_v18 = vsel %vm624_vm2, %v560_v43, %v580_v8  ;;  %v597_v19 = vrot.slane %v575_v62, 4  ;;  %v613_v22 = vrot.slane %v575_v62, 5  ;;  %v2197_v43 = vld [vmem:[%s2935_s3 + $0x90] sm:$0xff]   ;;  %v2214_v62 = vld [vmem:[%s2935_s3 + $0x158] sm:$0xff]   ;;  %v2224_v8 = vld [vmem:[%s2935_s3 + $0x1c0] sm:$0xff]  }
 0x166   :  { %1210 = vmatprep.mubr.bf16.mxu1 %v652_v10  ;;  %v646_v20 = vsel %vm642_vm5, %v637_v16, %v1809_v5  ;;  %v636_v21 = vsel %vm633_vm3, %v627_v18, %v594_v9  ;;  %v630_v23 = vsel %vm624_vm2, %v565_v45, %v583_v14  ;;  %v629_v27 = vsel %vm624_vm2, %v564_v40, %v582_v47  ;;  %v2201_v47 = vld [vmem:[%s2935_s3 + $0xa0] sm:$0xff]   ;;  %v2220_v4 = vld [vmem:[%s2935_s3 + $0x170] sm:$0xff]   ;;  %v2226_v11 = vld [vmem:[%s2935_s3 + $0x1c8] sm:$0xff]  }
 0x167   :  { %1211 = vmatmul.mubr.bf16.vlgmr.msra.gmra.mrb[0].mxu1 %v651_v15  ;;  %v654_v24 = vpack.c.bf16 %v646_v20, %v646_v20  ;;  %v645_v25 = vsel %vm642_vm5, %v636_v21, %v1808_v56  ;;  %v639_v26 = vsel %vm633_vm3, %v630_v23, %v597_v19  ;;  %v614_v28 = vrot.slane %v576_v50, 5  ;;  %v2204_v50 = vld [vmem:[%s2935_s3 + $0xf0] sm:$0xff]   ;;  %v2225_v9 = vld [vmem:[%s2935_s3 + $0x180] sm:$0xff]   ;;  %v2227_v13 = vld [vmem:[%s2935_s3 + $0x188] sm:$0xff]  }
 0x168   :  { %1930 = vmatpush3.bf16.msra.mxu1 %v2193_v12  ;;  %v648_v30 = vsel %vm642_vm5, %v639_v26, %v613_v22  ;;  %v638_v31 = vsel %vm633_vm3, %v629_v27, %v596_v54  ;;  %v585_v32 = vrot.slane %v569_v48, 1  ;;  %v599_v35 = vrot.slane %v577_v63, 4  ;;  %v2208_v54 = vld [vmem:[%s2935_s3 + $0x140] sm:$0xff]   ;;  %v2221_v5 = vld [vmem:[%s2935_s3 + $0x130] sm:$0xff]   ;;  %v2230_v16 = vld [vmem:[%s2935_s3 + $0x1d8] sm:$0xff]  }
 0x169   :  { %1250 = vmatprep.mubr.bf16.mxu1 %v654_v24  ;;  %1931 = vmatprep.subr.bf16.mxu1 %v2194_v17  ;;  %v2659_v34 = vsel %vm642_vm5, %v638_v31, %v612_v57  ;;  %v615_v36 = vrot.slane %v577_v63, 5  ;;  %v631_v39 = vsel %vm624_vm2, %v568_v41, %v584_v51  ;;  %v2199_v41 = vld [vmem:[%s2935_s3 + $0x98] sm:$0xff]   ;;  %v2205_v51 = vld [vmem:[%s2935_s3 + $0xb0] sm:$0xff]   ;;  %v653_v56 = vpack.c.bf16 %v645_v25, %v645_v25  ;;  %v2210_v57 = vld [vmem:[%s2935_s3 + $0x148] sm:$0xff]  }
 0x16a   :  { %v632_v38 = vsel %vm624_vm2, %v569_v48, %v585_v32  ;;  %v640_v42 = vsel %vm633_vm3, %v631_v39, %v598_v55  ;;  %v2202_v48 = vld [vmem:[%s2935_s3 + $0xe8] sm:$0xff]   ;;  %v2209_v55 = vld [vmem:[%s2935_s3 + $0x100] sm:$0xff]   ;;  %v656_v58 = vpack.c.bf16 %v648_v30, %v648_v30  ;;  %v2215_v63 = vld [vmem:[%s2935_s3 + $0x118] sm:$0xff]   ;;  %v655_v10 = vpack.c.bf16 %v2659_v34, %v2659_v34 }
 0x16b   :  { %v641_v40 = vsel %vm633_vm3, %v632_v38, %v599_v35  ;;  %v2674_v45 = vsel %vm642_vm5, %v640_v42, %v614_v28  ;;  %v2228_v14 = vld [vmem:[%s2935_s3 + $0x1d0] sm:$0xff]   ;;  %v2231_v17 = vld [vmem:[%s2935_s3 + $0x198] sm:$0xff]   ;;  %v2232_v18 = vld [vmem:[%s2935_s3 + $0x1e0] sm:$0xff]  }
 0x16c   :  { %1932 = vmatpush3.bf16.msra.mxu1 %v2195_v29  ;;  %v2671_v44 = vsel %vm642_vm5, %v641_v40, %v615_v36  ;;  %v2229_v15 = vld [vmem:[%s2935_s3 + $0x190] sm:$0xff]   ;;  %v2233_v19 = vld [vmem:[%s2935_s3 + $0x1a0] sm:$0xff]   ;;  %v2234_v20 = vld [vmem:[%s2935_s3 + $0x1e8] sm:$0xff]   ;;  %v657_v26 = vpack.c.bf16 %v2674_v45, %v2674_v45 }
 0x16d   :  { %1933 = vmatprep.subr.bf16.mxu1 %v2196_v33  ;;  %v658_v12 = vpack.c.bf16 %v2671_v44, %v2671_v44  ;;  %v2235_v21 = vld [vmem:[%s2935_s3 + $0x1a8] sm:$0xff]   ;;  %v2236_v22 = vld [vmem:[%s2935_s3 + $0x1f0] sm:$0xff]   ;;  %v2238_v24 = vld [vmem:[%s2935_s3 + $0x1f8] sm:$0xff]  }
 0x16e   :  { %v2237_v23 = vld [vmem:[%s2935_s3 + $0x1b0] sm:$0xff]   ;;  %v2239_v25 = vld [vmem:[%s2935_s3 + $0x1b8] sm:$0xff]   ;;  %v2240_v27 = vld [vmem:[%s2937_s5 + $0x40] sm:$0xff]  }
 0x16f   :  { %v2241_v28 = vld [vmem:[%s2937_s5] sm:$0xff]   ;;  %v2242_v29 = vld [vmem:[%s2937_s5 + $0x48] sm:$0xff]   ;;  %1995 = vmatprep.subr.bf16.mxu0 %v2240_v27  ;;  %v2244_v31 = vld [vmem:[%s2937_s5 + $0x50] sm:$0xff]  }
 0x170   :  { %1934 = vmatpush3.bf16.msra.mxu1 %v2197_v43  ;;  %1996 = vmatpush3.bf16.msra.mxu0 %v2241_v28  ;;  %v2243_v30 = vld [vmem:[%s2937_s5 + $0x8] sm:$0xff]   ;;  %v2245_v32 = vld [vmem:[%s2937_s5 + $0x10] sm:$0xff]   ;;  %v2246_v33 = vld [vmem:[%s2937_s5 + $0x58] sm:$0xff]  }
 0x171   :  { %1935 = vmatprep.subr.bf16.mxu1 %v2198_v37  ;;  %1997 = vmatprep.subr.bf16.mxu0 %v2242_v29  ;;  %v2247_v34 = vld [vmem:[%s2937_s5 + $0x18] sm:$0xff]   ;;  %v2248_v35 = vld [vmem:[%s2937_s5 + $0x60] sm:$0xff]   ;;  %v2250_v38 = vld [vmem:[%s2937_s5 + $0x68] sm:$0xff]   ;;  %v2292_v37 = vmov 0.0  }
 0x172   :  { %v2249_v36 = vld [vmem:[%s2937_s5 + $0x20] sm:$0xff]   ;;  %v2251_v39 = vld [vmem:[%s2937_s5 + $0x28] sm:$0xff]   ;;  %v2252_v40 = vld [vmem:[%s2937_s5 + $0x70] sm:$0xff]  }
 0x173   :  { %v2253_v42 = vld [vmem:[%s2937_s5 + $0x30] sm:$0xff]   ;;  %v2254_v43 = vld [vmem:[%s2937_s5 + $0x78] sm:$0xff]   ;;  %v2256_v45 = vld [vmem:[%s2939_s7] sm:$0xff]  }
 0x174   :  { %1936 = vmatpush3.bf16.msra.mxu1 %v2199_v41  ;;  %1998 = vmatpush3.bf16.msra.mxu0 %v2243_v30  ;;  %v2255_v44 = vld [vmem:[%s2937_s5 + $0x38] sm:$0xff]   ;;  %v2257_v41 = vld [vmem:[%s2939_s7 + $0x8] sm:$0xff]  }
 0x175   :  { %1937 = vmatprep.subr.bf16.mxu1 %v2200_v46  ;;  %1999 = vmatprep.subr.bf16.mxu0 %v2244_v31  ;;  %v2258_v46 = vld [vmem:[%s2939_s7 + $0x10] sm:$0xff]  }
 0x178   :  { %1938 = vmatpush3.bf16.msra.mxu1 %v2201_v47  ;;  %2000 = vmatpush3.bf16.msra.mxu0 %v2245_v32  ;;  %v2259_v47 = vld [vmem:[%s2939_s7 + $0x18] sm:$0xff]  }
 0x179   :  { %1939 = vmatprep.subr.bf16.mxu1 %v2202_v48  ;;  %2001 = vmatprep.subr.bf16.mxu0 %v2246_v33  ;;  %v2260_v48 = vld [vmem:[%s2939_s7 + $0x20] sm:$0xff]   ;;  %v2266_v33 = vld [vmem:[%s2941_s9 + $0x10] sm:$0xff]  }
 0x17c   :  { %1940 = vmatpush3.bf16.msra.mxu1 %v2203_v49  ;;  %2002 = vmatpush3.bf16.msra.mxu0 %v2247_v34  ;;  %v2267_v34 = vld [vmem:[%s2941_s9 + $0x18] sm:$0xff]  }
 0x17d   :  { %1941 = vmatprep.subr.bf16.mxu1 %v2204_v50  ;;  %2003 = vmatprep.subr.bf16.mxu0 %v2248_v35  ;;  %v1892_v35 = vld [vmem:[%s2940_s8] ss:$0 sm:$0xff] }
 0x180   :  { %1942 = vmatpush3.bf16.msra.mxu1 %v2205_v51  ;;  %2004 = vmatpush3.bf16.msra.mxu0 %v2249_v36 }
 0x181   :  { %1943 = vmatprep.subr.bf16.mxu1 %v2206_v52  ;;  %2005 = vmatprep.subr.bf16.mxu0 %v2250_v38 }
 0x184   :  { %1944 = vmatpush3.bf16.msra.mxu1 %v2207_v53  ;;  %2006 = vmatpush3.bf16.msra.mxu0 %v2251_v39 }
 0x185   :  { %1951 = vmatprep.subr.bf16.mxu1 %v2208_v54  ;;  %2007 = vmatprep.subr.bf16.mxu0 %v2252_v40  ;;  %v1810_v54 = vld [vmem:[%s2936_s4] ss:$0 sm:$0xff] }
 0x187   :  { %1251 = vmatmul.mubr.bf16.vlgmr.msra.gmra.mrb[4].mxu1 %v653_v56 }
 0x188   :  { %1952 = vmatpush3.bf16.msra.mxu1 %v2209_v55  ;;  %1290 = vmatprep.mubr.bf16.mxu1 %v656_v58 }
 0x189   :  { %1953 = vmatprep.subr.bf16.mxu1 %v2210_v57  ;;  %2008 = vmatpush3.bf16.msra.mxu0 %v2253_v42 }
 0x18a   :  { %2009 = vmatprep.subr.bf16.mxu0 %v2254_v43 }
 0x18c   :  { %1954 = vmatpush3.bf16.msra.mxu1 %v2211_v59 }
 0x18d   :  { %1955 = vmatprep.subr.bf16.mxu1 %v2212_v60  ;;  %2010 = vmatpush3.bf16.msra.mxu0 %v2255_v44 }
 0x18e   :  { %2051 = vmatprep.subr.bf16.mxu0 %v2292_v37 }
 0x190   :  { %1956 = vmatpush3.bf16.msra.mxu1 %v2213_v61 }
 0x191   :  { %1957 = vmatprep.subr.bf16.mxu1 %v2214_v62 }
 0x194   :  { %1958 = vmatpush3.bf16.msra.mxu1 %v2215_v63 }
 0x195   :  { %1959 = vmatprep.subr.bf16.mxu1 %v2216_v0 }
 0x198   :  { %1960 = vmatpush3.bf16.msra.mxu1 %v2217_v1 }
 0x199   :  { %1961 = vmatprep.subr.bf16.mxu1 %v2218_v2 }
 0x19c   :  { %1962 = vmatpush3.bf16.msra.mxu1 %v2219_v3 }
 0x19d   :  { %1963 = vmatprep.subr.bf16.mxu1 %v2220_v4 }
 0x1a0   :  { %1964 = vmatpush3.bf16.msra.mxu1 %v2221_v5 }
 0x1a1   :  { %1965 = vmatprep.subr.bf16.mxu1 %v2222_v6 }
 0x1a4   :  { %1966 = vmatpush3.bf16.msra.mxu1 %v2223_v7 }
 0x1a5   :  { %1973 = vmatprep.subr.bf16.mxu1 %v2224_v8 }
 0x1a7   :  { %1291 = vmatmul.mubr.bf16.vlgmr.msra.gmra.mrb[8].mxu1 %v655_v10 }
 0x1a8   :  { %1974 = vmatpush3.bf16.msra.mxu1 %v2225_v9  ;;  %1330 = vmatprep.mubr.bf16.mxu1 %v658_v12 }
 0x1a9   :  { %1975 = vmatprep.subr.bf16.mxu1 %v2226_v11 }
 0x1ac   :  { %1976 = vmatpush3.bf16.msra.mxu1 %v2227_v13 }
 0x1ad   :  { %1977 = vmatprep.subr.bf16.mxu1 %v2228_v14 }
 0x1b0   :  { %1978 = vmatpush3.bf16.msra.mxu1 %v2229_v15 }
 0x1b1   :  { %1979 = vmatprep.subr.bf16.mxu1 %v2230_v16 }
 0x1b4   :  { %1980 = vmatpush3.bf16.msra.mxu1 %v2231_v17 }
 0x1b5   :  { %1981 = vmatprep.subr.bf16.mxu1 %v2232_v18  ;;  %v2261_v18 = vld [vmem:[%s2939_s7 + $0x28] sm:$0xff]  }
 0x1b8   :  { %1982 = vmatpush3.bf16.msra.mxu1 %v2233_v19  ;;  %v2262_v19 = vld [vmem:[%s2939_s7 + $0x30] sm:$0xff]  }
 0x1b9   :  { %1983 = vmatprep.subr.bf16.mxu1 %v2234_v20  ;;  %v2263_v20 = vld [vmem:[%s2939_s7 + $0x38] sm:$0xff]  }
 0x1bc   :  { %1984 = vmatpush3.bf16.msra.mxu1 %v2235_v21  ;;  %v2264_v21 = vld [vmem:[%s2941_s9] sm:$0xff]  }
 0x1bd   :  { %1985 = vmatprep.subr.bf16.mxu1 %v2236_v22  ;;  %v2265_v22 = vld [vmem:[%s2941_s9 + $0x8] sm:$0xff]   ;;  %s2294_s9 = smov [#allocation2]  }
 0x1be   :  { %s1732_s12 = sshll.u32 %s2294_s9, 4  ;;  %s1733_s12 = int_to_ptr.vmem [resolvable:$true] %s1732_s12 }
 0x1bf   :  { %s2268_s8 = scalar_lea.vmem %s1733_s12, 32  ;;  %p2273_p1 = scmp.lt.s32.totalorder %s1733_s12, %s1733_s12 }
 0x1c0   :  { %1986 = vmatpush3.bf16.msra.mxu1 %v2237_v23  ;;  %p2269_p0 = scmp.ne.s32.totalorder %s1733_s12, %s2268_s8  ;;  %p2274_p2 = scmp.lt.s32.totalorder %s2268_s8, %s2268_s8 }
 0x1c1   :  { %1987 = vmatprep.subr.bf16.mxu1 %v2238_v24  ;;  %v1875_v24 = vld [vmem:[%s2938_s6] ss:$0 sm:$0xff] }
 0x1c2   :  { %p2275_p3 = por %p2274_p2, %p2273_p1 }
 0x1c4   :  { %1988 = vmatpush3.bf16.msra.mxu1 %v2239_v25  ;;  %p2276_p4 = pnand %p2275_p3, %p2269_p0 }
 0x1c5   :  { %2031 = vmatprep.subr.bf16.mxu1 %v2292_v37 }
 0x1c7   :  { %1331 = vmatmul.mubr.bf16.vlgmr.msra.gmra.mrb[12].mxu1 %v657_v26 }
 0x1c8   :  { %2032 = vmatpush3.bf16.msra.mxu1 %v2256_v45  ;;  %2047 = vmatprep.mubr.msk.bf16.mxu1 %vm2293_vm8, %v2292_v37  ;;  %v1901_v45 = vld [vmem:[%s2942_s10] ss:$0 sm:$0xff] }
 0x1c9   :  { %2033 = vmatprep.subr.bf16.mxu1 %v2292_v37 }
 0x1cc   :  { %2034 = vmatpush3.bf16.msra.mxu1 %v2257_v41 }
 0x1cd   :  { %2035 = vmatprep.subr.bf16.mxu1 %v2292_v37 }
 0x1d0   :  { %2036 = vmatpush3.bf16.msra.mxu1 %v2258_v46 }
 0x1d1   :  { %2037 = vmatprep.subr.bf16.mxu1 %v2292_v37 }
 0x1d4   :  { %2038 = vmatpush3.bf16.msra.mxu1 %v2259_v47 }
 0x1d5   :  { %2039 = vmatprep.subr.bf16.mxu1 %v2292_v37 }
 0x1d8   :  { %2040 = vmatpush3.bf16.msra.mxu1 %v2260_v48 }
 0x1d9   :  { %2041 = vmatprep.subr.bf16.mxu1 %v2292_v37 }
 0x1dc   :  { %2042 = vmatpush3.bf16.msra.mxu1 %v2261_v18 }
 0x1dd   :  { %2043 = vmatprep.subr.bf16.mxu1 %v2292_v37 }
 0x1e0   :  { %2044 = vmatpush3.bf16.msra.mxu1 %v2262_v19 }
 0x1e1   :  { %2045 = vmatprep.subr.bf16.mxu1 %v2292_v37 }
 0x1e4   :  { %2046 = vmatpush3.bf16.msra.mxu1 %v2263_v20 }
 0x23a   :  { %v1923_v49 = vpop.f32.mrb[0].mxu1 }
 0x23b   :  { %v1924_v50 = vpop.f32.mrb[1].mxu1 }
 0x23c   :  { %v1925_v51 = vadd.f32 %v1924_v50, %v1923_v49  ;;  %v1926_v52 = vpop.f32.mrb[2].mxu1 }
 0x23d   :  { %v1927_v53 = vpop.f32.mrb[3].mxu1 }
 0x23e   :  { %v1213_v57 = vadd.f32 %v1925_v51, %v1810_v54 }
 0x25a   :  { %v1945_v55 = vpop.f32.mrb[4].mxu1 }
 0x25b   :  { %v1946_v56 = vpop.f32.mrb[5].mxu1 }
 0x25c   :  { %v1947_v58 = vadd.f32 %v1946_v56, %v1945_v55  ;;  %v1948_v59 = vpop.f32.mrb[6].mxu1 }
 0x25d   :  { %v1949_v60 = vpop.f32.mrb[7].mxu1 }
 0x25e   :  { %v1253_v61 = vadd.f32 %v1947_v58, %v1213_v57 }
 0x27a   :  { %v1967_v62 = vpop.f32.mrb[8].mxu1 }
 0x27b   :  { %v1968_v63 = vpop.f32.mrb[9].mxu1 }
 0x27c   :  { %v1969_v0 = vadd.f32 %v1968_v63, %v1967_v62  ;;  %v1970_v1 = vpop.f32.mrb[10].mxu1 }
 0x27d   :  { %v1971_v2 = vpop.f32.mrb[11].mxu1 }
 0x27e   :  { %v1293_v3 = vadd.f32 %v1969_v0, %v1253_v61 }
 0x29a   :  { %v1989_v4 = vpop.f32.mrb[12].mxu1 }
 0x29b   :  { %v1990_v5 = vpop.f32.mrb[13].mxu1 }
 0x29c   :  { %v1991_v6 = vadd.f32 %v1990_v5, %v1989_v4  ;;  %v1992_v7 = vpop.f32.mrb[14].mxu1 }
 0x29d   :  { %v1993_v8 = vpop.f32.mrb[15].mxu1 }
 0x29e   :  { %v1333_v9 = vadd.f32 %v1991_v6, %v1293_v3 }
 0x2a0   :  { %vm1338_vm7 = vcmp.gt.f32.partialorder %v1333_v9, 0.0  ;;  %v1339_v10 = vmul.f32 0.01, %v1333_v9 }
 0x2a2   :  { %v1340_v11 = vsel %vm1338_vm7, %v1333_v9, %v1339_v10 }
 0x2a3   :  { %v1342_v12 = vrot.slane %v1340_v11, 1 }
 0x2a5   :  { %v1344_v13 = vrot.slane %v1342_v12, 1  ;;  %v1346_v14 = vsel %vm624_vm2, %v1340_v11, %v1342_v12 }
 0x2a6   :  { %v1348_v17 = vpack.c.bf16 %v1346_v14, %v1346_v14 }
 0x2a7   :  { %v1347_v15 = vsel %vm624_vm2, %v1342_v12, %v1344_v13 }
 0x2a8   :  { %v1349_v16 = vpack.c.bf16 %v1347_v15, %v1347_v15 }
 0x2aa   :  { %1517 = vmatprep.mubr.bf16.mxu0 %v1349_v16 }
 0x2ab   :  { %1518 = vmatmul.mubr.bf16.vlgmr.msra.gmra.mrb[4].mxu0 %v1348_v17 }
 0x2ac   :  { %2059 = vmatprep.mubr.msk.bf16.mxu0 %vm2293_vm8, %v2292_v37  ;;  %2052 = vmatpush3.bf16.msra.mxu0 %v2264_v21 }
 0x2ad   :  { %2053 = vmatprep.subr.bf16.mxu0 %v2292_v37 }
 0x2b0   :  { %2054 = vmatpush3.bf16.msra.mxu0 %v2265_v22 }
 0x2b1   :  { %2055 = vmatprep.subr.bf16.mxu0 %v2292_v37 }
 0x2b4   :  { %2056 = vmatpush3.bf16.msra.mxu0 %v2266_v33 }
 0x2b5   :  { %2057 = vmatprep.subr.bf16.mxu0 %v2292_v37 }
 0x2b8   :  { %2058 = vmatpush3.bf16.msra.mxu0 %v2267_v34 }
 0x37e   :  { %v2011_v23 = vpop.f32.mrb[4].mxu0 }
 0x37f   :  { %v2012_v25 = vpop.f32.mrb[5].mxu0 }
 0x380   :  { %v2013_v26 = vadd.f32 %v2012_v25, %v2011_v23  ;;  %v2014_v27 = vpop.f32.mrb[6].mxu0 }
 0x381   :  { %v2015_v28 = vpop.f32.mrb[7].mxu0 }
 0x382   :  { %v1520_v29 = vadd.f32 %v2013_v26, %v1875_v24 }
 0x384   :  { %vm1525_vm9 = vcmp.gt.f32.partialorder %v1520_v29, 0.0  ;;  %v1526_v30 = vmul.f32 0.01, %v1520_v29 }
 0x386   :  { %v1527_v31 = vsel %vm1525_vm9, %v1520_v29, %v1526_v30 }
 0x387   :  { %v1528_v32 = vpack.c.bf16 %v1527_v31, %v1527_v31 }
 0x389   :  { %2048 = vmatmul.mubr.bf16.vlgmr.msra.gmra.mrb[16].mxu1 %v1528_v32 }
 0x45c   :  { %v1634_v36 = vpop.f32.mrb[16].mxu1 }
 0x45d   :  { %v1635_v38 = vadd.f32 %v1892_v35, %v1634_v36  ;;  %v2049_v39 = vpop.f32.mrb[17].mxu1 }
 0x45e   :  { %v1637_v40 = vpop.f32.mrb[18].mxu1 }
 0x45f   :  { %v1640_v42 = vmax.f32 %v1635_v38, 0.0  ;;  %v2050_v43 = vpop.f32.mrb[19].mxu1 }
 0x461   :  { %v1641_v44 = vpack.c.bf16 %v1640_v42, %v1640_v42 }
 0x463   :  { %2060 = vmatmul.mubr.msk.bf16.vlgmr.msra.gmra.mrb[8].mxu0 %vm1681_vm10, %v1641_v44 }
 0x536   :  { %v1719_v37 = vpop.f32.mrb[8].mxu0 }
 0x537   :  { %v1720_v41 = vadd.f32 %v1901_v45, %v1719_v37  ;;  %v2061_v46 = vpop.f32.mrb[9].mxu0 }
 0x538   :  { %v1722_v47 = vpop.f32.mrb[10].mxu0 }
 0x539   :  { %1725 = vst [vmem:[#allocation2] sm:$0x3] %v1720_v41  ;;  %v2062_v48 = vpop.f32.mrb[11].mxu0 }
 0x53a   :  { %2279 = shalt.err (!%p2276_p4)
}
 0x53b   :  { %s2280_s10 = scalar_lea.hbm %s2943_s11, 32 }
 0x53c   :  { %p2281_p5 = scmp.ne.s32.totalorder %s2943_s11, %s2280_s10  ;;  %p2284_p6 = scmp.lt.u32.totalorder %s2280_s10, %s2943_s11 }
 0x53e   :  { %p2286_p7 = pnand %p2284_p6, %p2281_p5 }
 0x540   :  { %2289 = shalt.err (!%p2286_p7)
}
 0x541   :  { %1735 = dma.vmem_to_hbm [thread:$0]  %s1733_s12, 32, %s2943_s11, [#allocation3]  }
 0x542   :  { %2290 = dma.done.wait [#allocation3], 32  }
 0x543   :  { %2291 = vsyncadd [#allocation3], 4294967264 }
 0x544   :  { %1739 = vsyncpa [#allocation3], 1 }

</bundles_post_ra>
